<compile_context>
chip_gen: v6e
topology: v6e:2x2x1
jax: 0.10.0
libtpu: 0.0.40
codegen_flags: <defaults>
</compile_context>

<pallas_src>
import jax
import jax.numpy as jnp
from jax.experimental import pallas as pl
from jax.experimental.pallas import tpu as pltpu

_LANES = 128


def _ce_loss_kernel(x_ref, m_ref, out_ref):
    """One row-block of the interleaved-logit slab -> (1, 128) partial sum.

    x_ref: (tm, 128) logits, flat interleaved [x0, x1, x0, x1, ...] per row.
    m_ref: (tm, 128) int8 sign plane: (1 - 2*label) at each pair's x0 lane,
           0 at x1 lanes and at padded / out-of-bounds slots.
    out_ref: (1, 128) f32 lane-wise partial sum for this block.
    """
    x = x_ref[...].astype(jnp.float32)
    m = m_ref[...].astype(jnp.float32)          # {-1, 0, +1}

    # Bring lane j+1 down to lane j (shift 127 == -1 mod 128, np.roll semantics),
    # so at every even lane x holds x0 and xp holds x1 of the same pair.
    # Lane rotation runs on the XLU slot, which is otherwise idle here.
    xp = pltpu.roll(x, shift=_LANES - 1, axis=1)

    # z = (1 - 2*label) * (x1 - x0) at valid (x0) lanes; irrelevant elsewhere.
    z = m * (xp - x)

    # Numerically stable softplus(z) = max(z, 0) + log(1 + exp(-|z|)).
    # (exp/log go to the EUP slot; jnp.log1p is avoided for lowering safety.)
    nll = jnp.maximum(z, 0.0) + jnp.log(1.0 + jnp.exp(-jnp.abs(z)))

    # Zero out x1 lanes, padding and any garbage from an overrunning last block
    # (m == 0 there); NaN/Inf in garbage slots is discarded by the select.
    nll = jnp.where(m != 0.0, nll, 0.0)

    # Lane-wise partial sum (pure VPU adds); cross-lane reduce happens once,
    # in the wrapper, on a tiny (nblocks, 128) array.
    out_ref[...] = jnp.sum(nll, axis=0, keepdims=True)


def ce_loss(logits: jax.Array, labels: jax.Array, *, tm_max: int = 8192) -> jax.Array:
    """logits: (B, T, 2) float; labels: (B, T) int in {0,1} -> scalar f32 loss."""
    b, t, c = logits.shape
    assert c == 2, "CELoss (VAD) expects exactly 2 classes"
    n = b * t            # number of (frame) pairs
    n2 = 2 * n           # flat interleaved length

    # ---- logits slab: zero-copy reshape when 128 | 2N, else minimal pad ----
    x_flat = logits.reshape(n2)                      # contiguous reshape: free
    rows = pl.cdiv(n2, _LANES)
    pad2 = rows * _LANES - n2
    if pad2:
        # Only when 2N % 128 != 0; padded slots are masked via m == 0 below.
        x_flat = jnp.pad(x_flat, (0, pad2))
    x_slab = x_flat.reshape(rows, _LANES)

    # ---- grid / tile (rows per block; each row = 64 pairs) ----
    tm = min(tm_max, rows)          # full-extent block when the input is small
    nblocks = pl.cdiv(rows, tm)     # last block may overrun the slab (masked)

    # ---- int8 sign plane, padded to the FULL gridded extent so any x rows the
    #      last block reads out of bounds are guaranteed to see m == 0 ----
    sign = (1 - 2 * labels.reshape(n)).astype(jnp.int8)          # {+1, -1}
    m2 = jnp.stack([sign, jnp.zeros_like(sign)], axis=-1).reshape(n2)
    rows_m = nblocks * tm
    m_slab = jnp.pad(m2, (0, rows_m * _LANES - n2)).reshape(rows_m, _LANES)

    x_bytes = x_slab.size * x_slab.dtype.itemsize
    m_bytes = m_slab.size * m_slab.dtype.itemsize
    out_bytes = nblocks * _LANES * 4

    partial = pl.pallas_call(
        _ce_loss_kernel,
        out_shape=jax.ShapeDtypeStruct((nblocks, _LANES), jnp.float32),
        grid=(nblocks,),
        in_specs=[
            pl.BlockSpec((tm, _LANES), lambda i: (i, 0)),   # interleaved logits
            pl.BlockSpec((tm, _LANES), lambda i: (i, 0)),   # int8 sign plane
        ],
        out_specs=pl.BlockSpec((1, _LANES), lambda i: (i, 0)),
        compiler_params=pltpu.CompilerParams(
            # Independent row blocks: lets megacore (v7x) shard the grid axis;
            # harmless (sequential) on single-core v5e/v6e.
            dimension_semantics=("parallel",),
            # 2 * (4 MiB x + 1 MiB m) = 10 MiB double-buffered at tm=8192;
            # 32 MiB is within every generation's scoped-VMEM ceiling.
            vmem_limit_bytes=32 * 1024 * 1024,
        ),
        cost_estimate=pl.CostEstimate(
            flops=10 * n,
            transcendentals=2 * n,
            bytes_accessed=x_bytes + m_bytes + out_bytes,
        ),
    )(x_slab, m_slab)

    # Tiny final reduce (nblocks x 128 floats) + mean scaling.
    return jnp.sum(partial) * (1.0 / n)


def ce_loss_ref(logits: jax.Array, labels: jax.Array) -> jax.Array:
    """Plain-JAX reference for sanity checking."""
    b, t, c = logits.shape
    x = logits.reshape(b * t, c).astype(jnp.float32)
    lbl = labels.reshape(b * t).astype(jnp.int32)
    logp = jax.nn.log_softmax(x, axis=-1)
    nll = -jnp.take_along_axis(logp, lbl[:, None], axis=-1)[:, 0]
    return jnp.mean(nll)


if __name__ == "__main__":
    key = jax.random.PRNGKey(0)
    k1, k2, k3, k4 = jax.random.split(key, 4)

    # Case 1: 2*B*T is a multiple of 128 -> zero-copy logits path.
    B, T = 2, 64
    logits = jax.random.normal(k1, (B, T, 2), dtype=jnp.float32)
    labels = jax.random.randint(k2, (B, T), 0, 2, dtype=jnp.int32)
    loss = jax.block_until_ready(ce_loss(logits, labels))
    ref = jax.block_until_ready(ce_loss_ref(logits, labels))
    assert jnp.allclose(loss, ref, atol=1e-5, rtol=1e-5), (loss, ref)

    # Case 2: ragged size (2*B*T % 128 != 0) -> minimal-pad path.
    B2, T2 = 3, 37
    logits2 = jax.random.normal(k3, (B2, T2, 2), dtype=jnp.float32)
    labels2 = jax.random.randint(k4, (B2, T2), 0, 2, dtype=jnp.int32)
    loss2 = jax.block_until_ready(ce_loss(logits2, labels2))
    ref2 = jax.block_until_ready(ce_loss_ref(logits2, labels2))
    assert jnp.allclose(loss2, ref2, atol=1e-5, rtol=1e-5), (loss2, ref2)

    print("KERNEL_OK")
</pallas_src>

<mosaic_0001>
module attributes {stable_mosaic.version = 11 : i64} {
  func.func @_ce_loss_kernel(%arg0: i32, %arg1: memref<2x128xf32, #tpu.memory_space<vmem>>, %arg2: memref<2x128xi8, #tpu.memory_space<vmem>>, %arg3: memref<1x128xf32, #tpu.memory_space<vmem>>) attributes {dimension_semantics = [#tpu.dimension_semantics<parallel>], iteration_bounds = array<i64: 1>, scalar_prefetch = 0 : i64, scratch_operands = 0 : i64, tpu.core_type = #tpu.core_type<tc>, window_params = [{transform_indices = @transform_0, window_bounds = array<i64: 2, 128>}, {transform_indices = @transform_1, window_bounds = array<i64: 2, 128>}, {transform_indices = @transform_2, window_bounds = array<i64: 1, 128>}]} {
    %c0 = arith.constant 0 : index
    %c0_0 = arith.constant 0 : index
    %0 = vector.load %arg1[%c0, %c0_0] : memref<2x128xf32, #tpu.memory_space<vmem>>, vector<2x128xf32>
    %c0_1 = arith.constant 0 : index
    %c0_2 = arith.constant 0 : index
    %1 = vector.load %arg2[%c0_1, %c0_2] : memref<2x128xi8, #tpu.memory_space<vmem>>, vector<2x128xi8>
    %2 = arith.sitofp %1 : vector<2x128xi8> to vector<2x128xf32>
    %c127_i32 = arith.constant 127 : i32
    %3 = tpu.dynamic_rotate %0 by %c127_i32 dim 1 : vector<2x128xf32>, i32 -> vector<2x128xf32>
    %4 = arith.subf %3, %0 : vector<2x128xf32>
    %5 = arith.mulf %2, %4 : vector<2x128xf32>
    %cst = arith.constant 0.000000e+00 : f32
    %6 = vector.broadcast %cst : f32 to vector<2x128xf32>
    %7 = arith.maximumf %5, %6 : vector<2x128xf32>
    %8 = math.absf %5 : vector<2x128xf32>
    %cst_3 = arith.constant 0.000000e+00 : f32
    %9 = vector.broadcast %cst_3 : f32 to vector<2x128xf32>
    %10 = arith.subf %9, %8 : vector<2x128xf32>
    %11 = math.exp %10 : vector<2x128xf32>
    %cst_4 = arith.constant 1.000000e+00 : f32
    %12 = vector.broadcast %cst_4 : f32 to vector<2x128xf32>
    %13 = arith.addf %12, %11 : vector<2x128xf32>
    %14 = math.log %13 : vector<2x128xf32>
    %15 = arith.addf %7, %14 : vector<2x128xf32>
    %cst_5 = arith.constant 0.000000e+00 : f32
    %16 = vector.broadcast %cst_5 : f32 to vector<2x128xf32>
    %17 = arith.cmpf one, %2, %16 : vector<2x128xf32>
    %cst_6 = arith.constant 0.000000e+00 : f32
    %18 = vector.broadcast %cst_6 : f32 to vector<2x128xf32>
    %19 = arith.select %17, %15, %18 : vector<2x128xi1>, vector<2x128xf32>
    %cst_7 = arith.constant dense<0.000000e+00> : vector<128xf32>
    %20 = vector.multi_reduction <add>, %19, %cst_7 [0] : vector<2x128xf32> to vector<128xf32>
    %21 = vector.shape_cast %20 : vector<128xf32> to vector<1x128xf32>
    %c0_8 = arith.constant 0 : index
    %c0_9 = arith.constant 0 : index
    %22 = vector.load %arg3[%c0_8, %c0_9] : memref<1x128xf32, #tpu.memory_space<vmem>>, vector<1x128xf32>
    tpu.vector_store %arg3[%c0_8, %c0_9], %21 {strides = array<i32>} : memref<1x128xf32, #tpu.memory_space<vmem>>, vector<1x128xf32>,
    return
  }
  func.func @transform_0(%arg0: i32) -> (i32, i32) {
    %c0_i32 = arith.constant 0 : i32
    %c0_i32_0 = arith.constant 0 : i32
    return %arg0, %c0_i32 : i32, i32
  }
  func.func @transform_1(%arg0: i32) -> (i32, i32) {
    %c0_i32 = arith.constant 0 : i32
    %c0_i32_0 = arith.constant 0 : i32
    return %arg0, %c0_i32 : i32, i32
  }
  func.func @transform_2(%arg0: i32) -> (i32, i32) {
    %c0_i32 = arith.constant 0 : i32
    %c0_i32_0 = arith.constant 0 : i32
    return %arg0, %c0_i32 : i32, i32
  }
}

</mosaic_0001>

<bundles_post_ra>
// kernel: tpu_custom_call.1
= control target key start
LH: loop header
LB: loop body
LE: loop exit
PB: predicated region body
PF: predicated region fallthrough
CT: control target
= control target key end

     0   :  { %7 = vsyncpa [#allocation3], 0  ;;  %s145_s0 = inlined_call_operand.hbm [shape: f32[2,128], index: 0, kind: input, shape index: {}]   ;;  %s146_s1 = inlined_call_operand.vmem [shape: s8[2,128], index: 1, kind: input, shape index: {}]   ;;  %s147_s2 = inlined_call_operand.hbm [shape: f32[1,128], index: 2, kind: output, shape index: {}]  }
   0x1   :  { %8 = vsyncpa [#allocation4], 0  ;;  %s118_s9 = smov [#allocation2]  }
   0x2   :  { %s15_s10 = sshll.u32 %s118_s9, 4  ;;  %s16_s10 = int_to_ptr.vmem [resolvable:$true] %s15_s10 }
   0x3   :  { %s82_s11 = scalar_lea.vmem %s16_s10, 32  ;;  %p87_p1 = scmp.lt.s32.totalorder %s16_s10, %s16_s10 }
   0x4   :  { %p83_p0 = scmp.ne.s32.totalorder %s16_s10, %s82_s11  ;;  %p88_p2 = scmp.lt.s32.totalorder %s82_s11, %s82_s11 }
   0x6   :  { %p89_p3 = por %p88_p2, %p87_p1 }
   0x8   :  { %p90_p4 = pnand %p89_p3, %p83_p0 }
   0xa   :  { %93 = shalt.err (!%p90_p4)
}
   0xb   :  { %18 = dma.hbm_to_vmem [thread:$0]  %s145_s0, 32, %s16_s10, [#allocation3]  }
   0xc   :  { %114 = dma.done.wait [#allocation3], 32  }
   0xd   :  { %115 = vsyncadd [#allocation3], 4294967264  ;;  %v24_v0 = vld [vmem:[#allocation2] sm:$0x3]  ;;  %s119_s14 = smov 127   ;;  %vm43_vm1 = vcmask 1041408  }
   0xe   :  { %28 = vrot.lane.b32.xlu0 %v24_v0, %s119_s14  ;;  %v25_v1 = vld [vmem:[%s146_s1] sm:$0x1]  ;;  %s120_s0 = smov [#allocation5]  }
   0xf   :  { %v26_v2 = vunpack.c.0.s8 %v25_v1  ;;  %s58_s1 = sshll.u32 %s120_s0, 4  ;;  %s59_s1 = int_to_ptr.vmem [resolvable:$true] %s58_s1 }
  0x10   :  { %s94_s17 = scalar_lea.vmem %s59_s1, 16  ;;  %s98_s18 = scalar_lea.vmem %s59_s1, 32 }
  0x11   :  { %v27_v3 = vcvt.s32.f32 %v26_v2  ;;  %p95_p5 = scmp.ne.s32.totalorder %s59_s1, %s94_s17  ;;  %p99_p6 = scmp.lt.s32.totalorder %s59_s1, %s59_s1 }
  0x12   :  { %p100_p7 = scmp.lt.s32.totalorder %s98_s18, %s94_s17 }
  0x13   :  { %vm41_vm0 = vcmp.ne.f32.partialorder %v27_v3, 0.0 }
  0x14   :  { %p101_p8 = por %p100_p7, %p99_p6 }
  0x16   :  { %p102_p9 = pnand %p101_p8, %p95_p5 }
  0x80   :  { %v29_v4 = vpop.permute.xlu0 %28 }
  0x81   :  { %v30_v5 = vsub.f32 %v29_v4, %v24_v0 }
  0x83   :  { %v31_v6 = vmul.f32 %v30_v5, %v27_v3 }
  0x85   :  { %v33_v7 = vand.u32 2147483647, %v31_v6  ;;  %v32_v13 = vmax.f32 %v31_v6, 0.0 }
  0x87   :  { %v34_v8 = vsub.f32 0.0, %v33_v7 }
  0x89   :  { %v35_v9 = vmul.f32 1.442695, %v34_v8 }
  0x8b   :  { %70 = vpow2.f32 %v35_v9 }
  0x98   :  { %v71_v10 = vpop.eup %70 }
  0x99   :  { %v37_v11 = vadd.f32 1.0, %v71_v10 }
  0x9b   :  { %72 = vlog2.f32 %v37_v11 }
  0xa8   :  { %v73_v12 = vpop.eup %72 }
  0xa9   :  { %v39_v14 = vmul.f32 0.6931472, %v73_v12 }
  0xab   :  { %v40_v15 = vadd.f32 %v39_v14, %v32_v13 }
  0xad   :  { %v42_v16 = vsel %vm41_vm0, %v40_v15, 0.0 }
  0xae   :  { %v44_v17 = vsel %vm43_vm1, %v42_v16, 0.0 }
  0xaf   :  { %v45_v18 = vrot.slane %v44_v17, 4 }
  0xb1   :  { %v46_v19 = vadd.f32 %v45_v18, %v44_v17 }
  0xb3   :  { %v47_v20 = vrot.slane %v46_v19, 2 }
  0xb5   :  { %v48_v21 = vadd.f32 %v47_v20, %v46_v19 }
  0xb7   :  { %v49_v22 = vrot.slane %v48_v21, 1 }
  0xb9   :  { %v50_v23 = vadd.f32 %v49_v22, %v48_v21 }
  0xbb   :  { %51 = vst [vmem:[#allocation5] sm:$0x1] %v50_v23 }
  0xbc   :  { %105 = shalt.err (!%p102_p9)
}
  0xbd   :  { %61 = dma.vmem_to_hbm [thread:$0]  %s59_s1, 16, %s147_s2, [#allocation4]  }
  0xbe   :  { %116 = dma.done.wait [#allocation4], 16  }
  0xbf   :  { %117 = vsyncadd [#allocation4], 4294967280 }
  0xc0   :  { %65 = vsyncpa [#allocation3], 1 }
  0xc1   :  { %66 = vsyncpa [#allocation4], 1 }

</bundles_post_ra>
